<compile_context>
chip_gen: v7x
topology: tpu7x:2x2x1
jax: 0.10.0
libtpu: 0.0.40
codegen_flags: <defaults>
</compile_context>

<pallas_src>
import functools

import jax
import jax.numpy as jnp
from jax import lax
from jax.experimental import pallas as pl
from jax.experimental.pallas import tpu as pltpu


_LANE = 128
_ACC_SUBLANES = 8          # f32 accumulator slab height (one vreg sublane block)
_NUM_CORES = 2             # parallel grid axis; v7x uses both TCs, others loop


def _sublane_multiple(dtype) -> int:
    itemsize = jnp.dtype(dtype).itemsize
    return {4: 8, 2: 16, 1: 32}.get(itemsize, 8)


def _vmem_capacity_bytes() -> int:
    try:
        info = pltpu.get_tpu_info()
        cap = getattr(info, "vmem_capacity_bytes", None)
        if cap:
            return int(cap)
    except Exception:
        pass
    return 64 * 1024 * 1024    # conservative default: v7x per-TC VMEM


def _round_up(x: int, m: int) -> int:
    return -(-x // m) * m


def _pick_tile_rows(rows, d, pred_dtype, mask_dtype, num_cores, budget_bytes, sub):
    """Rows per grid step, derived from the lane-PADDED VMEM footprint."""
    pred_item = jnp.dtype(pred_dtype).itemsize
    mask_item = jnp.dtype(mask_dtype).itemsize
    d_pad = _round_up(d, _LANE)                     # pred (tr, d) pads lanes to 128
    # 2 preds + 2 masks (mask lane dim 1 also pads to 128), each double-buffered.
    per_row = 2 * (2 * d_pad * pred_item + 2 * _LANE * mask_item)
    tr = budget_bytes // max(per_row, 1)
    rows_per_core = _round_up(-(-rows // num_cores), sub)
    tr = min(tr, rows_per_core)
    tr = max(sub, (tr // sub) * sub)
    # Prefer a tile that divides rows with an even per-core block count: keeps
    # the ragged-row select out of the kernel entirely.  Search within 25% of
    # the budget-optimal size (trace-time only).
    if rows % tr != 0 or (-(-rows // tr)) % num_cores != 0:
        lo = max(sub, (int(tr * 0.75) // sub) * sub)
        cand = tr
        while cand >= lo:
            if rows % cand == 0 and (rows // cand) % num_cores == 0:
                return cand
            cand -= sub
    return tr


def _loss_kernel(p1_ref, p2_ref, m1_ref, m2_ref, acc_ref, *,
                 total_rows, rows_per_tile, steps_per_core, total_blocks,
                 needs_row_mask):
    c = pl.program_id(0)       # core (parallel)
    i = pl.program_id(1)       # step within this core's row range (arbitrary)

    @pl.when(i == 0)
    def _init():
        acc_ref[...] = jnp.zeros_like(acc_ref)

    # Cast in-kernel (inputs arrive at native dtype).
    p1 = p1_ref[...].astype(jnp.float32)             # (tr, d)
    p2 = p2_ref[...].astype(jnp.float32)             # (tr, d)
    k1 = 1.0 - m1_ref[...].astype(jnp.float32)       # (tr, 1)
    k2 = 1.0 - m2_ref[...].astype(jnp.float32)       # (tr, 1)

    diff = p1 * k1 - p2 * k2                         # lane-broadcast of (tr, 1)
    sq = diff * diff                                 # (tr, d) f32

    def fold(x):
        # vreg-aligned split of the sublane axis: (tr, d) -> (tr//8, 8, d);
        # the axis-0 reduce is pure VALU adds into the resident accumulator.
        return x.reshape(-1, acc_ref.shape[0], x.shape[-1]).sum(axis=0)

    if not needs_row_mask:
        # Rows divide evenly into tiles and cores: no masking anywhere.
        acc_ref[...] += fold(sq)
    else:
        blk = c * steps_per_core + i

        @pl.when(blk < total_blocks - 1)             # interior tile: hot path
        def _interior():
            acc_ref[...] += fold(sq)

        @pl.when(blk >= total_blocks - 1)            # ragged edge / phantom tile
        def _edge():
            row0 = blk * rows_per_tile
            rid = row0 + lax.broadcasted_iota(jnp.int32, (sq.shape[0], 1), 0)
            # select (not multiply) so NaN/Inf garbage in padded rows is dropped
            acc_ref[...] += fold(jnp.where(rid < total_rows, sq, 0.0))


def multi_decoder_loss(pred1, pred2, mask1, mask2, *, num_cores=_NUM_CORES):
    """loss = sum_{n,d} mean_l (pred1*(1-mask1) - pred2*(1-mask2))**2."""
    n, l, d = pred1.shape
    rows = n * l

    # Pure reshapes (contiguous views; no dtype change, no extra HBM bytes).
    p1 = pred1.reshape(rows, d)
    p2 = pred2.reshape(rows, d)
    m1 = mask1.reshape(rows, 1)
    m2 = mask2.reshape(rows, 1)

    # Chip-aware VMEM budgets: half the capacity for the streamed double
    # buffers, scoped limit a bit above that (v7x: ~32+16=48 MiB of 64 MiB;
    # v5e/v6e: ~64+16=80 MiB of 128 MiB).
    vmem_cap = _vmem_capacity_bytes()
    input_budget = vmem_cap // 2
    vmem_limit = min(vmem_cap - 4 * 1024 * 1024, input_budget + 16 * 1024 * 1024)

    sub = max(_sublane_multiple(pred1.dtype), _sublane_multiple(mask1.dtype), 8)
    tr = _pick_tile_rows(rows, d, pred1.dtype, mask1.dtype, num_cores,
                         input_budget, sub)

    total_blocks = pl.cdiv(rows, tr)
    steps_per_core = pl.cdiv(total_blocks, num_cores)
    needs_row_mask = (rows % tr != 0) or (total_blocks % num_cores != 0)
    last_blk = total_blocks - 1

    if needs_row_mask:
        # Clamp phantom blocks into range; their rows are masked in-kernel.
        def row_map(c, i):
            return (jnp.minimum(c * steps_per_core + i, last_blk), 0)
    else:
        def row_map(c, i):
            return (c * steps_per_core + i, 0)

    kernel = functools.partial(
        _loss_kernel,
        total_rows=rows, rows_per_tile=tr, steps_per_core=steps_per_core,
        total_blocks=total_blocks, needs_row_mask=needs_row_mask)

    out_rows = num_cores * _ACC_SUBLANES
    in_bytes = sum(int(a.size) * a.dtype.itemsize for a in (p1, p2, m1, m2))
    cost = pl.CostEstimate(flops=7 * rows * d, transcendentals=0,
                           bytes_accessed=in_bytes + out_rows * d * 4)

    partial_sums = pl.pallas_call(
        kernel,
        out_shape=jax.ShapeDtypeStruct((out_rows, d), jnp.float32),
        grid=(num_cores, steps_per_core),
        in_specs=[
            pl.BlockSpec((tr, d), row_map),    # pred1 rows-tile
            pl.BlockSpec((tr, d), row_map),    # pred2 rows-tile
            pl.BlockSpec((tr, 1), row_map),    # mask1 rows-tile
            pl.BlockSpec((tr, 1), row_map),    # mask2 rows-tile
        ],
        # One resident (8, d) accumulator block per core; written back once.
        out_specs=pl.BlockSpec((_ACC_SUBLANES, d), lambda c, i: (c, 0)),
        compiler_params=pltpu.CompilerParams(
            dimension_semantics=("parallel", "arbitrary"),
            vmem_limit_bytes=int(vmem_limit)),
        cost_estimate=cost,
    )(p1, p2, m1, m2)

    # Tiny final reduce (2*8 x d elements) + the 1/L mean factor.
    return jnp.sum(partial_sums) / jnp.float32(l)


class Multi_decoder_losses:
    """JAX/Pallas re-implementation of the PyTorch Multi_decoder_losses module."""

    def __init__(self, alpha, beta, patch_size, grid_size, norm_pix_loss=False):
        self.alpha = alpha
        self.beta = beta
        self.patch_size = patch_size
        self.grid_size = grid_size
        self.norm_pix_loss = norm_pix_loss

    def patchify(self, imgs):
        # Pure-JAX helper kept for module fidelity; its result never affects the
        # returned loss in the reference forward, so it is not called below.
        p = self.patch_size
        n = imgs.shape[0]
        h, w = imgs.shape[2] // p[0], imgs.shape[3] // p[1]
        x = imgs.reshape(n, 3, h, p[0], w, p[1])
        x = jnp.einsum('nchpwq->nhwpqc', x)
        return x.reshape(n, h * w, p[0] * p[1] * 3)

    def __call__(self, imgs, pred1, pred2, idx1, idx2, mask1, mask2):
        # target1/target2 (patchify + optional norm_pix_loss) are dead code with
        # respect to the returned loss in the reference forward -> skipped.
        # TODO(synk): compute/return the targets if a future variant consumes them.
        return multi_decoder_loss(pred1, pred2, mask1, mask2)


if __name__ == "__main__":
    key = jax.random.PRNGKey(0)
    k_img, k_p1, k_p2, k_m1, k_m2, k_p3, k_p4, k_m3, k_m4 = jax.random.split(key, 9)

    # ---- Case 1: shapes consistent with the module: patch=(4,4), H=W=16 ----
    N, H, W = 2, 16, 16
    patch = (4, 4)
    J = 16                                    # idx length (rows of H selected)
    L = (J // patch[0]) * (W // patch[1])     # 4 * 4 = 16
    D = patch[0] * patch[1] * 3               # 48

    imgs = jax.random.normal(k_img, (N, 3, H, W), dtype=jnp.float32)
    pred1 = jax.random.normal(k_p1, (N, L, D), dtype=jnp.float32)
    pred2 = jax.random.normal(k_p2, (N, L, D), dtype=jnp.float32)
    idx1 = jnp.arange(J, dtype=jnp.int32)
    idx2 = jnp.arange(J, dtype=jnp.int32)[::-1]
    mask1 = (jax.random.uniform(k_m1, (N, L)) < 0.75).astype(jnp.float32)
    mask2 = (jax.random.uniform(k_m2, (N, L)) < 0.75).astype(jnp.float32)

    module = Multi_decoder_losses(alpha=1.0, beta=1.0, patch_size=patch,
                                  grid_size=(J // patch[0], W // patch[1]))

    loss = module(imgs, pred1, pred2, idx1, idx2, mask1, mask2)
    loss = jax.block_until_ready(loss)

    p1m = pred1 * (1.0 - mask1[..., None])
    p2m = pred2 * (1.0 - mask2[..., None])
    loss_ref = jnp.sum(jnp.mean((p1m - p2m) ** 2, axis=1))
    assert jnp.allclose(loss, loss_ref, rtol=1e-5, atol=1e-5), (loss, loss_ref)

    # ---- Case 2: ragged row count (exercises the edge-tile masked path) ----
    N2, L2, D2 = 3, 7, 48
    pred1b = jax.random.normal(k_p3, (N2, L2, D2), dtype=jnp.float32)
    pred2b = jax.random.normal(k_p4, (N2, L2, D2), dtype=jnp.float32)
    mask1b = (jax.random.uniform(k_m3, (N2, L2)) < 0.5).astype(jnp.float32)
    mask2b = (jax.random.uniform(k_m4, (N2, L2)) < 0.5).astype(jnp.float32)

    loss2 = multi_decoder_loss(pred1b, pred2b, mask1b, mask2b)
    loss2 = jax.block_until_ready(loss2)

    p1mb = pred1b * (1.0 - mask1b[..., None])
    p2mb = pred2b * (1.0 - mask2b[..., None])
    loss2_ref = jnp.sum(jnp.mean((p1mb - p2mb) ** 2, axis=1))
    assert jnp.allclose(loss2, loss2_ref, rtol=1e-5, atol=1e-5), (loss2, loss2_ref)

    print("KERNEL_OK")
</pallas_src>

<mosaic_0001>
module attributes {stable_mosaic.version = 11 : i64} {
  func.func @_loss_kernel(%arg0: i32, %arg1: i32, %arg2: memref<16x48xf32, #tpu.memory_space<vmem>>, %arg3: memref<16x48xf32, #tpu.memory_space<vmem>>, %arg4: memref<16x1xf32, #tpu.memory_space<vmem>>, %arg5: memref<16x1xf32, #tpu.memory_space<vmem>>, %arg6: memref<8x48xf32, #tpu.memory_space<vmem>>) attributes {dimension_semantics = [#tpu.dimension_semantics<parallel>, #tpu.dimension_semantics<arbitrary>], iteration_bounds = array<i64: 2, 1>, scalar_prefetch = 0 : i64, scratch_operands = 0 : i64, tpu.core_type = #tpu.core_type<tc>, window_params = [{transform_indices = @transform_0, window_bounds = array<i64: 16, 48>}, {transform_indices = @transform_1, window_bounds = array<i64: 16, 48>}, {transform_indices = @transform_2, window_bounds = array<i64: 16, 1>}, {transform_indices = @transform_3, window_bounds = array<i64: 16, 1>}, {transform_indices = @transform_4, window_bounds = array<i64: 8, 48>}]} {
    %c0_i32 = arith.constant 0 : i32
    %0 = arith.cmpi eq, %arg1, %c0_i32 : i32
    %1 = arith.extui %0 : i1 to i32
    %c0_i32_0 = arith.constant 0 : i32
    %2 = arith.cmpi ne, %1, %c0_i32_0 : i32
    scf.if %2 {
      %cst_14 = arith.constant 0.000000e+00 : f32
      %22 = vector.broadcast %cst_14 : f32 to vector<8x48xf32>
      %c0_15 = arith.constant 0 : index
      %c0_16 = arith.constant 0 : index
      %23 = vector.load %arg6[%c0_15, %c0_16] : memref<8x48xf32, #tpu.memory_space<vmem>>, vector<8x48xf32>
      tpu.vector_store %arg6[%c0_15, %c0_16], %22 {strides = array<i32>} : memref<8x48xf32, #tpu.memory_space<vmem>>, vector<8x48xf32>,
    } else {
    }
    %c0 = arith.constant 0 : index
    %c0_1 = arith.constant 0 : index
    %3 = vector.load %arg2[%c0, %c0_1] : memref<16x48xf32, #tpu.memory_space<vmem>>, vector<16x48xf32>
    %c0_2 = arith.constant 0 : index
    %c0_3 = arith.constant 0 : index
    %4 = vector.load %arg3[%c0_2, %c0_3] : memref<16x48xf32, #tpu.memory_space<vmem>>, vector<16x48xf32>
    %c0_4 = arith.constant 0 : index
    %c0_5 = arith.constant 0 : index
    %5 = vector.load %arg4[%c0_4, %c0_5] : memref<16x1xf32, #tpu.memory_space<vmem>>, vector<16x1xf32>
    %cst = arith.constant 1.000000e+00 : f32
    %6 = vector.broadcast %cst : f32 to vector<16x1xf32>
    %7 = arith.subf %6, %5 : vector<16x1xf32>
    %c0_6 = arith.constant 0 : index
    %c0_7 = arith.constant 0 : index
    %8 = vector.load %arg5[%c0_6, %c0_7] : memref<16x1xf32, #tpu.memory_space<vmem>>, vector<16x1xf32>
    %cst_8 = arith.constant 1.000000e+00 : f32
    %9 = vector.broadcast %cst_8 : f32 to vector<16x1xf32>
    %10 = arith.subf %9, %8 : vector<16x1xf32>
    %11 = vector.broadcast %7 : vector<16x1xf32> to vector<16x48xf32>
    %12 = arith.mulf %3, %11 : vector<16x48xf32>
    %13 = vector.broadcast %10 : vector<16x1xf32> to vector<16x48xf32>
    %14 = arith.mulf %4, %13 : vector<16x48xf32>
    %15 = arith.subf %12, %14 : vector<16x48xf32>
    %16 = arith.mulf %15, %15 : vector<16x48xf32>
    %c0_9 = arith.constant 0 : index
    %c0_10 = arith.constant 0 : index
    %17 = vector.load %arg6[%c0_9, %c0_10] : memref<8x48xf32, #tpu.memory_space<vmem>>, vector<8x48xf32>
    %18 = vector.shape_cast %16 : vector<16x48xf32> to vector<2x8x48xf32>
    %cst_11 = arith.constant dense<0.000000e+00> : vector<8x48xf32>
    %19 = vector.multi_reduction <add>, %18, %cst_11 [0] : vector<2x8x48xf32> to vector<8x48xf32>
    %20 = arith.addf %17, %19 : vector<8x48xf32>
    %c0_12 = arith.constant 0 : index
    %c0_13 = arith.constant 0 : index
    %21 = vector.load %arg6[%c0_12, %c0_13] : memref<8x48xf32, #tpu.memory_space<vmem>>, vector<8x48xf32>
    tpu.vector_store %arg6[%c0_12, %c0_13], %20 {strides = array<i32>} : memref<8x48xf32, #tpu.memory_space<vmem>>, vector<8x48xf32>,
    return
  }
  func.func @transform_0(%arg0: i32, %arg1: i32) -> (i32, i32) {
    %c1_i32 = arith.constant 1 : i32
    %0 = arith.muli %arg0, %c1_i32 : i32
    %1 = arith.addi %0, %arg1 : i32
    %c0_i32 = arith.constant 0 : i32
    %c0_i32_0 = arith.constant 0 : i32
    return %1, %c0_i32 : i32, i32
  }
  func.func @transform_1(%arg0: i32, %arg1: i32) -> (i32, i32) {
    %c1_i32 = arith.constant 1 : i32
    %0 = arith.muli %arg0, %c1_i32 : i32
    %1 = arith.addi %0, %arg1 : i32
    %c0_i32 = arith.constant 0 : i32
    %c0_i32_0 = arith.constant 0 : i32
    return %1, %c0_i32 : i32, i32
  }
  func.func @transform_2(%arg0: i32, %arg1: i32) -> (i32, i32) {
    %c1_i32 = arith.constant 1 : i32
    %0 = arith.muli %arg0, %c1_i32 : i32
    %1 = arith.addi %0, %arg1 : i32
    %c0_i32 = arith.constant 0 : i32
    %c0_i32_0 = arith.constant 0 : i32
    return %1, %c0_i32 : i32, i32
  }
  func.func @transform_3(%arg0: i32, %arg1: i32) -> (i32, i32) {
    %c1_i32 = arith.constant 1 : i32
    %0 = arith.muli %arg0, %c1_i32 : i32
    %1 = arith.addi %0, %arg1 : i32
    %c0_i32 = arith.constant 0 : i32
    %c0_i32_0 = arith.constant 0 : i32
    return %1, %c0_i32 : i32, i32
  }
  func.func @transform_4(%arg0: i32, %arg1: i32) -> (i32, i32) {
    %c0_i32 = arith.constant 0 : i32
    %c0_i32_0 = arith.constant 0 : i32
    return %arg0, %c0_i32 : i32, i32
  }
}

</mosaic_0001>

<bundles_post_ra>
// kernel: tpu_custom_call.1
= control target key start
LH: loop header
LB: loop body
LE: loop exit
PB: predicated region body
PF: predicated region fallthrough
CT: control target
= control target key end

     0   :  { %9 = vsyncpa [#allocation3], 0  ;;  %s793_s0 = inlined_call_operand.vmem [shape: f32[32,48], index: 0, kind: input, shape index: {}]   ;;  %s794_s1 = inlined_call_operand.vmem [shape: f32[32,48], index: 1, kind: input, shape index: {}]   ;;  %s795_s2 = inlined_call_operand.vmem [shape: f32[32,1], index: 2, kind: input, shape index: {}]   ;;  %s796_s3 = inlined_call_operand.vmem [shape: f32[32,1], index: 3, kind: input, shape index: {}]   ;;  %s797_s4 = inlined_call_operand.hbm [shape: f32[16,48], index: 4, kind: output, shape index: {}]  }
   0x1   :  { %11 = vsyncpa [#allocation3 + $0x1], 0  ;;  %s659_s15 = smov 0   ;;  %s661_s16 = smov 0  }
   0x2   :  { %s663_s17 = smov 0   ;;  %s665_s18 = smov 0  }
   0x3   :  { %s667_s19 = smov 0   ;;  %s669_s20 = smov 0  }
   0x4 LB: > { %s474_s21 = sadd.s32 4294967295, %s629_s20   ;;  %s475_s22 = sadd.s32 4294967294, %s629_s20   ;;  %s629_s20 = sphi %s669_s20, %s17_s20   ;;  %s625_s19 = sphi %s667_s19, %s804_s19   ;;  %s621_s18 = sphi %s665_s18, %s803_s18   ;;  %s617_s17 = sphi %s663_s17, %s802_s17   ;;  %s613_s16 = sphi %s661_s16, %s801_s16   ;;  %s609_s15 = sphi %s659_s15, %s800_s15  }
   0x5   : > { %s29_s23 = sadd.s32 1, %s625_s19  ;;  %s148_s24 = sadd.s32 1, %s617_s17 }
   0x6   : > { %p31_p0 = scmp.ge.s32.totalorder %s29_s23, 2  ;;  %p158_p1 = scmp.ne.s32.totalorder %s617_s17, %s613_s16 }
   0x7   : > { %p159_p2 = scmp.eq.s32.totalorder %s474_s21, 1  ;;  %p164_p3 = scmp.ne.s32.totalorder %s613_s16, %s609_s15 }
   0x8   : > { %s806_s23 = smov (%p31_p0, %s29_s23), 0  ;;  %p165_p5 = scmp.eq.s32.totalorder %s475_s22, 1 }
   0x9   : > { %p699_p4 = por %p159_p2, %p158_p1  ;;  %s145_s26 = ssub.s32 %s625_s19, %s806_s23 }
   0xa   : > { %p478_p6 = scmp.ge.s32.totalorder %s629_s20, 1  ;;  %p146_p7 = scmp.eq.s32.totalorder %s145_s26, 0 }
   0xb   : > { %p706_p8 = por %p165_p5, %p164_p3  ;;  %p227_p9 = scmp.lt.s32.totalorder %s629_s20, 3 }
   0xc   : > { %s712_s28 = scalar_select %p146_p7, %s617_s17, %s148_s24  }
   0xd   : > { %p228_p10 = pnand %p478_p6, %p227_p9 }
   0xe   : > { %s480_s29 = sshll.u32 (!%p228_p10), %s621_s18, 1  ;;  %v631_v0 = vmov (!%p228_p10), 0   ;;  %vm308_vm0 = vcmask (!%p228_p10), 392192   ;;  %s269_s11 = sand.u32 (!%p228_p10), 1, %s613_s16   ;;  %v632_v9 = vmov (!%p228_p10), 0.0  }
   0xf   : > { %231 = sbr.rel (%p228_p10) target bundleno = 186 (0xba), region = 36  ;;  %550 = vset.pattern.permute.xlu1 (!%p228_p10), %v631_v0  ;;  %549 = vset.pattern.permute.xlu0 (!%p228_p10), %v631_v0  ;;  %p274_p11 = scmp.lt.s32.totalorder (!%p228_p10), %s480_s29, 3 }
  0x10   : > { %s479_s12 = sshll.u32 (!%p228_p10), %s269_s11, 3  ;;  %s358_s9 = scalar_lea.sflag (!%p228_p10), [#allocation3], %s269_s11 }
  0x11   : > { %s724_s13 = scalar_lea.vmem (!%p228_p10), [#allocation2], %s479_s12 }
  0x12   : > { %309 = vst.msk [vmem:[%s724_s13] sm:$0xff] (!%p228_p10), %vm308_vm0, %v632_v9  ;;  %s371_s5 = sshll.u32 (!%p228_p10), %s724_s13, 4  ;;  %s744_s5 = int_to_ptr.vmem [resolvable:$true] %s371_s5 }
  0x16   : > { %s808_s29 = smov (!%p274_p11, %s480_s29), 3 }
  0x17   : > { %s481_s30 = sshll.u32 %s808_s29, 3 }
  0x18   : > { %s301_s7 = scalar_lea.vmem %s796_s3, %s481_s30  ;;  %s293_s10 = scalar_lea.vmem %s795_s2, %s481_s30 }
  0x19   : > { %v318_v1 = vld [vmem:[%s301_s7] sm:$0xff]  ;;  %v319_v2 = vld [vmem:[%s301_s7 + $0x8] sm:$0xff]  ;;  %s285_s22 = scalar_lea.vmem %s794_s1, %s481_s30  ;;  %s277_s29 = scalar_lea.vmem %s793_s0, %s481_s30 }
  0x1a   : > { %v314_v3 = vld [vmem:[%s293_s10] sm:$0xff]  ;;  %v320_v4 = vsub.f32 1.0, %v318_v1  ;;  %v315_v5 = vld [vmem:[%s293_s10 + $0x8] sm:$0xff]  ;;  %v321_v7 = vsub.f32 1.0, %v319_v2  ;;  %s489_s30 = sshll.u32 %s621_s18, 7  ;;  %s551_s10 = scalar_lea.vmem %s744_s5, 128 }
  0x1b   : > { %v316_v6 = vsub.f32 1.0, %v314_v3  ;;  %v317_v8 = vsub.f32 1.0, %v315_v5  ;;  %v312_v10 = vld [vmem:[%s285_s22] sm:$0xff]  ;;  %v313_v16 = vld [vmem:[%s285_s22 + $0x8] sm:$0xff]  ;;  %s742_s8 = scalar_lea.hbm %s797_s4, %s489_s30  ;;  %p552_p12 = scmp.ne.s32.totalorder %s744_s5, %s551_s10 }
  0x1c   : > { %336 = vperm.xlu1 %550, %v320_v4   ;;  %v310_v11 = vld [vmem:[%s277_s29] sm:$0xff]  ;;  %v311_v17 = vld [vmem:[%s277_s29 + $0x8] sm:$0xff]  ;;  %s633_s18 = smov [#allocation2]  }
  0x1d   : > { %324 = vperm.xlu0 %549, %v316_v6   ;;  %v350_v28 = vld [vmem:[%s724_s13] sm:$0xff]  ;;  %p553_p13 = pnand %p552_p12, %p699_p4  ;;  %s555_s12 = sshll.u32 %s633_s18, 4  ;;  %s556_s12 = int_to_ptr.vmem [resolvable:$false] %s555_s12 }
  0x1e   : > { %s557_s14 = scalar_lea.vmem %s556_s12, 256  ;;  %p558_p1 = scmp.lt.s32.totalorder %s744_s5, %s556_s12 }
  0x1f   : > { %p554_p0 = pneg %p553_p13  ;;  %p559_p2 = scmp.lt.s32.totalorder %s557_s14, %s551_s10 }
  0x20   : > { %341 = vperm.xlu1 %550, %v321_v7  }
  0x21   : > { %329 = vperm.xlu0 %549, %v317_v8   ;;  %p560_p3 = por %p559_p2, %p558_p1 }
  0x23   : > { %p561_p5 = pnand %p560_p3, %p554_p0 }
  0x9b   : > { %v337_v12 = vpop.permute.xlu1 %336 }
  0x9c   : > { %v325_v13 = vpop.permute.xlu0 %324  ;;  %v344_v14 = vmul.f32 %v337_v12, %v312_v10 }
  0x9d   : > { %v332_v15 = vmul.f32 %v325_v13, %v310_v11 }
  0x9f   : > { %v346_v18 = vsub.f32 %v332_v15, %v344_v14  ;;  %v342_v19 = vpop.permute.xlu1 %341 }
  0xa0   : > { %v330_v20 = vpop.permute.xlu0 %329  ;;  %v345_v21 = vmul.f32 %v342_v19, %v313_v16 }
  0xa1   : > { %v333_v22 = vmul.f32 %v330_v20, %v311_v17  ;;  %v348_v23 = vmul.f32 %v346_v18, %v346_v18 }
  0xa3   : > { %v347_v24 = vsub.f32 %v333_v22, %v345_v21  ;;  %v352_v26 = vsel %vm308_vm0, %v348_v23, 0.0 }
  0xa5   : > { %v349_v25 = vmul.f32 %v347_v24, %v347_v24 }
  0xa7   : > { %v353_v27 = vsel %vm308_vm0, %v349_v25, 0.0 }
  0xa8   : > { %v354_v29 = vadd.f32 %v353_v27, %v352_v26 }
  0xaa   : > { %v355_v30 = vadd.f32 %v354_v29, %v350_v28 }
  0xac   : > { %356 = vst.msk [vmem:[%s724_s13] sm:$0xff] %vm308_vm0, %v355_v30 }
  0xad   : > { %564 = shalt.err (!%p561_p5)
}
  0xae   : > { %s565_s11 = scalar_lea.hbm %s742_s8, 128  ;;  %s569_s22 = scalar_lea.hbm %s797_s4, 256 }
  0xaf   : > { %p566_p6 = scmp.ne.s32.totalorder %s742_s8, %s565_s11  ;;  %p570_p10 = scmp.lt.u32.totalorder %s742_s8, %s797_s4 }
  0xb0   : > { %p571_p11 = scmp.lt.u32.totalorder %s569_s22, %s565_s11  ;;  %p573_p13 = scmp.lt.u32.totalorder %s565_s11, %s742_s8 }
  0xb1   : > { %p567_p7 = pnand %p566_p6, %p699_p4 }
  0xb2   : > { %p572_p12 = por %p571_p11, %p570_p10 }
  0xb3   : > { %p568_p9 = pneg %p567_p7 }
  0xb4   : > { %p574_p0 = por %p573_p13, %p572_p12 }
  0xb6   : > { %p575_p1 = pnand %p574_p0, %p568_p9 }
  0xb8   : > { %578 = shalt.err (!%p575_p1)
}
  0xb9   : > { %492 = dma.vmem_to_hbm [thread:$0]  (%p699_p4), %s744_s5, 128, %s742_s8, %s358_s9  }
  0xba PF: > { %p498_p2 = scmp.ge.s32.totalorder %s629_s20, 2  ;;  %s383_s29 = sand.u32 1, %s609_s15  }
  0xbb   : > { %s384_s30 = scalar_lea.sflag [#allocation3], %s383_s29 }
  0xbc   : > { %p495_p3 = pnand %p498_p2, %p706_p8 }
  0xbe   : > { %604 = dma.done.wait (!%p495_p3), %s384_s30, 128  }
  0xbf   : > { %606 = vsyncadd (!%p495_p3), %s384_s30, 4294967168  ;;  %s17_s20 = sadd.s32 1, %s629_s20   ;;  %s800_s15 = smov %s613_s16 }
  0xc0   : > { %p14_p5 = scmp.ge.s32.totalorder %s17_s20, 4   ;;  %s801_s16 = smov %s617_s17 }
  0xc1   : > { %s802_s17 = smov %s712_s28  ;;  %s803_s18 = smov %s625_s19 }
  0xc2   : > { %s804_s19 = smov %s806_s23  ;;  %16 = sbr.rel (!%p14_p5) target bundleno = 4 (0x4), region = 84 }
  0xc9   :  { %389 = vsyncpa [#allocation3], 1 }
  0xca   :  { %391 = vsyncpa [#allocation3 + $0x1], 1 }

</bundles_post_ra>
